<compile_context>
chip_gen: v7x
topology: tpu7x:2x2x1
jax: 0.10.0
libtpu: 0.0.40
codegen_flags: <defaults>
</compile_context>

<pallas_src>
import jax
import jax.numpy as jnp
from jax import lax
from jax.experimental import pallas as pl
from jax.experimental.pallas import tpu as pltpu

IN_FEATURES = 3072
OUT_FEATURES = 1
TILE_B_MAX = 1024  # 1024*3072*4B = 12 MiB per x tile; 24 MiB double-buffered.


def _round_up(n, m):
    return ((n + m - 1) // m) * m


def linear_kernel(x_ref, w_ref, b_ref, o_ref):
    # x_ref: (tile_b, F) VMEM (streamed, auto double-buffered per grid step)
    # w_ref: (1, F)      VMEM (lane-dense, same block every step -> resident)
    # b_ref: (1, 1)      SMEM scalar
    # o_ref: (1, tile_b) VMEM (lane-dense output row)
    x = x_ref[...]
    w = w_ref[...]
    b = b_ref[0, 0]
    # Contract feature dims with w as the LHS so the MXU result is already the
    # lane-dense (1, tile_b) row: no relayout/transpose of the tiny result and
    # unmasked output stores. Fully hidden under the 12 MiB x DMA either way.
    y = lax.dot_general(
        w, x,
        dimension_numbers=(((1,), (1,)), ((), ())),
        preferred_element_type=jnp.float32,
    )  # (OUT_FEATURES, tile_b) == (1, tile_b)
    o_ref[...] = (y + b).astype(o_ref.dtype)


def _pick_tile_b(B):
    if B > TILE_B_MAX:
        return TILE_B_MAX
    if B > 256:
        # Guarantee >= 2 grid steps so v7x's two TensorCores both get work.
        return _round_up(pl.cdiv(B, 2), 8)
    return _round_up(B, 8)


def linear_forward(x, weight, bias, *, tile_b=None):
    """x: (B, 3072) f32, weight: (1, 3072) f32 (PyTorch layout), bias: (1,) f32."""
    B, F = x.shape
    assert F == IN_FEATURES and weight.shape == (OUT_FEATURES, IN_FEATURES)

    if tile_b is None:
        tile_b = _pick_tile_b(B)
    assert tile_b > 0 and tile_b % 8 == 0, "tile_b must be a positive multiple of 8"

    num_tiles = pl.cdiv(B, tile_b)  # ragged last x tile; no jnp.pad copy of x
    bias2 = bias.reshape(1, 1).astype(jnp.float32)

    cost = pl.CostEstimate(
        flops=2 * num_tiles * tile_b * F * OUT_FEATURES,
        transcendentals=0,
        bytes_accessed=B * F * 4 + OUT_FEATURES * F * 4 + num_tiles * tile_b * 4,
    )

    out = pl.pallas_call(
        linear_kernel,
        out_shape=jax.ShapeDtypeStruct((num_tiles, tile_b), jnp.float32),
        grid=(num_tiles,),
        in_specs=[
            # x: one batch tile per grid step (auto double-buffered DMA)
            pl.BlockSpec((tile_b, F), lambda i: (i, 0)),
            # weight: same block every step -> resident in VMEM, lane-dense
            pl.BlockSpec((OUT_FEATURES, F), lambda i: (0, 0)),
            # bias: scalar in SMEM (no padded VMEM tile / DMA)
            pl.BlockSpec(memory_space=pltpu.MemorySpace.SMEM),
        ],
        # Lane-dense output: one (1, tile_b) row per grid step.
        out_specs=pl.BlockSpec((1, tile_b), lambda i: (i, 0)),
        compiler_params=pltpu.CompilerParams(
            dimension_semantics=("parallel",),  # shard batch tiles across TCs (v7x)
            vmem_limit_bytes=32 << 20,          # 24 MiB double-buffered x + slack
        ),
        cost_estimate=cost,
    )(x, weight, bias2)

    # Row i of `out` holds batch rows [i*tile_b, (i+1)*tile_b); C-order flatten
    # restores batch order, then drop the ragged tail.
    return out.reshape(-1)[:B].reshape(B, OUT_FEATURES)


if __name__ == "__main__":
    key = jax.random.PRNGKey(0)
    kx, kw, kb, kx2 = jax.random.split(key, 4)

    # Deterministic init, same scheme as torch.nn.Linear: U(-1/sqrt(fan_in), ...)
    bound = 1.0 / (IN_FEATURES ** 0.5)
    weight = jax.random.uniform(kw, (OUT_FEATURES, IN_FEATURES),
                                minval=-bound, maxval=bound, dtype=jnp.float32)
    bias = jax.random.uniform(kb, (OUT_FEATURES,),
                              minval=-bound, maxval=bound, dtype=jnp.float32)

    # Small single-tile case.
    B = 8
    x = jax.random.normal(kx, (B, IN_FEATURES), dtype=jnp.float32)
    y = linear_forward(x, weight, bias)
    jax.block_until_ready(y)
    y_ref = x @ weight.T + bias
    assert y.shape == (B, OUT_FEATURES)
    assert jnp.allclose(y, y_ref, atol=1e-4, rtol=1e-4)

    # Small multi-tile + ragged-last-tile case (exercises the no-pad path).
    B2 = 20
    x2 = jax.random.normal(kx2, (B2, IN_FEATURES), dtype=jnp.float32)
    y2 = linear_forward(x2, weight, bias, tile_b=8)  # 3 tiles, last one ragged
    jax.block_until_ready(y2)
    y2_ref = x2 @ weight.T + bias
    assert y2.shape == (B2, OUT_FEATURES)
    assert jnp.allclose(y2, y2_ref, atol=1e-4, rtol=1e-4)

    print("KERNEL_OK")
</pallas_src>

<mosaic_0001>
module attributes {stable_mosaic.version = 11 : i64} {
  func.func @linear_kernel(%arg0: i32, %arg1: memref<8x3072xf32, #tpu.memory_space<vmem>>, %arg2: memref<1x3072xf32, #tpu.memory_space<vmem>>, %arg3: memref<1x1xf32, #tpu.memory_space<smem>>, %arg4: memref<1x8xf32, #tpu.memory_space<vmem>>) attributes {dimension_semantics = [#tpu.dimension_semantics<parallel>], iteration_bounds = array<i64: 1>, scalar_prefetch = 0 : i64, scratch_operands = 0 : i64, tpu.core_type = #tpu.core_type<tc>, window_params = [{transform_indices = @transform_0, window_bounds = array<i64: 8, 3072>}, {pipeline_mode = #tpu.pipeline_mode<synchronous>, transform_indices = @transform_1, window_bounds = array<i64: 1, 3072>}, {transform_indices = @transform_2, window_bounds = array<i64: 1, 1>}, {transform_indices = @transform_3, window_bounds = array<i64: 1, 8>}]} {
    %c0 = arith.constant 0 : index
    %c0_0 = arith.constant 0 : index
    %0 = vector.load %arg1[%c0, %c0_0] : memref<8x3072xf32, #tpu.memory_space<vmem>>, vector<8x3072xf32>
    %c0_1 = arith.constant 0 : index
    %c0_2 = arith.constant 0 : index
    %1 = vector.load %arg2[%c0_1, %c0_2] : memref<1x3072xf32, #tpu.memory_space<vmem>>, vector<1x3072xf32>
    %c0_3 = arith.constant 0 : index
    %c0_4 = arith.constant 0 : index
    %2 = memref.load %arg3[%c0_3, %c0_4] : memref<1x1xf32, #tpu.memory_space<smem>>
    %cst = arith.constant dense<0.000000e+00> : vector<1x8xf32>
    %3 = tpu.matmul %1, %0, %cst {dimension_numbers = #tpu.dot_dimension_numbers<[1], [1], [0], [0], [0, 0, 1, 0], [], []>} : vector<1x3072xf32>, vector<8x3072xf32>, vector<1x8xf32> -> vector<1x8xf32>
    %4 = vector.broadcast %2 : f32 to vector<1x8xf32>
    %5 = arith.addf %3, %4 : vector<1x8xf32>
    %c0_5 = arith.constant 0 : index
    %c0_6 = arith.constant 0 : index
    %6 = vector.load %arg4[%c0_5, %c0_6] : memref<1x8xf32, #tpu.memory_space<vmem>>, vector<1x8xf32>
    tpu.vector_store %arg4[%c0_5, %c0_6], %5 {strides = array<i32>} : memref<1x8xf32, #tpu.memory_space<vmem>>, vector<1x8xf32>,
    return
  }
  func.func @transform_0(%arg0: i32) -> (i32, i32) {
    %c0_i32 = arith.constant 0 : i32
    %c0_i32_0 = arith.constant 0 : i32
    return %arg0, %c0_i32 : i32, i32
  }
  func.func @transform_1(%arg0: i32) -> (i32, i32) {
    %c0_i32 = arith.constant 0 : i32
    %c0_i32_0 = arith.constant 0 : i32
    %c0_i32_1 = arith.constant 0 : i32
    return %c0_i32, %c0_i32_0 : i32, i32
  }
  func.func @transform_2(%arg0: i32) -> (i32, i32) {
    %c0_i32 = arith.constant 0 : i32
    %c0_i32_0 = arith.constant 0 : i32
    %c0_i32_1 = arith.constant 0 : i32
    return %c0_i32, %c0_i32_0 : i32, i32
  }
  func.func @transform_3(%arg0: i32) -> (i32, i32) {
    %c0_i32 = arith.constant 0 : i32
    %c0_i32_0 = arith.constant 0 : i32
    return %arg0, %c0_i32 : i32, i32
  }
}

</mosaic_0001>

<bundles_post_ra>
// kernel: tpu_custom_call.1
= control target key start
LH: loop header
LB: loop body
LE: loop exit
PB: predicated region body
PF: predicated region fallthrough
CT: control target
= control target key end

     0   :  { %9 = vsyncpa [#allocation4], 0  ;;  %s1279_s0 = inlined_call_operand.hbm [shape: f32[8,3072], index: 0, kind: input, shape index: {}]   ;;  %s1280_s1 = inlined_call_operand.hbm [shape: f32[1,3072], index: 1, kind: input, shape index: {}]   ;;  %s1281_s2 = inlined_call_operand.<no memory space> [shape: f32[1,1], index: 2, kind: input, shape index: {}]   ;;  %s1282_s3 = inlined_call_operand.hbm [shape: f32[1,8], index: 3, kind: output, shape index: {}]  }
   0x1   :  { %10 = vsyncpa [#allocation7], 0 }
   0x2   :  { %11 = vsyncpa [#allocation5], 0  ;;  %s1147_s12 = smov [#allocation3]   ;;  %s1148_s14 = smov [#allocation6]  }
   0x3   :  { %s18_s13 = sshll.u32 %s1147_s12, 4  ;;  %s28_s15 = sshll.u32 %s1148_s14, 4  ;;  %s19_s13 = int_to_ptr.vmem [resolvable:$true] %s18_s13  ;;  %s29_s15 = int_to_ptr.vmem [resolvable:$true] %s28_s15 }
   0x4   :  { %s1075_s18 = scalar_lea.hbm %s1279_s0, 3072 }
   0x5   :  { %p1076_p0 = scmp.ne.s32.totalorder %s1279_s0, %s1075_s18  ;;  %p1079_p1 = scmp.lt.u32.totalorder %s1075_s18, %s1279_s0 }
   0x7   :  { %p1081_p2 = pnand %p1079_p1, %p1076_p0 }
   0x9   :  { %1084 = shalt.err (!%p1081_p2)
}
   0xa   :  { %s1085_s23 = scalar_lea.vmem %s19_s13, 3072  ;;  %p1090_p4 = scmp.lt.s32.totalorder %s19_s13, %s19_s13 }
   0xb   :  { %p1086_p3 = scmp.ne.s32.totalorder %s19_s13, %s1085_s23  ;;  %p1091_p5 = scmp.lt.s32.totalorder %s1085_s23, %s1085_s23 }
   0xd   :  { %p1092_p6 = por %p1091_p5, %p1090_p4 }
   0xf   :  { %p1093_p7 = pnand %p1092_p6, %p1086_p3 }
  0x11   :  { %1096 = shalt.err (!%p1093_p7)
}
  0x12   :  { %21 = dma.hbm_to_vmem [thread:$0]  %s1279_s0, 3072, %s19_s13, [#allocation4]  }
  0x13   :  { %s1097_s28 = scalar_lea.hbm %s1280_s1, 384 }
  0x14   :  { %p1098_p8 = scmp.ne.s32.totalorder %s1280_s1, %s1097_s28  ;;  %p1101_p9 = scmp.lt.u32.totalorder %s1097_s28, %s1280_s1 }
  0x16   :  { %p1103_p10 = pnand %p1101_p9, %p1098_p8 }
  0x18   :  { %1106 = shalt.err (!%p1103_p10)
}
  0x19   :  { %s1107_s6 = scalar_lea.vmem %s29_s15, 384  ;;  %p1112_p12 = scmp.lt.s32.totalorder %s29_s15, %s29_s15 }
  0x1a   :  { %p1108_p11 = scmp.ne.s32.totalorder %s29_s15, %s1107_s6  ;;  %p1113_p13 = scmp.lt.s32.totalorder %s1107_s6, %s1107_s6 }
  0x1c   :  { %p1114_p0 = por %p1113_p13, %p1112_p12 }
  0x1e   :  { %p1115_p1 = pnand %p1114_p0, %p1108_p11 }
  0x20   :  { %1118 = shalt.err (!%p1115_p1)
}
  0x21   :  { %31 = dma.hbm_to_vmem [thread:$0]  %s1280_s1, 384, %s29_s15, [#allocation7]  }
  0x22   :  { %1141 = dma.done.wait [#allocation4], 3072  }
  0x23   :  { %1142 = vsyncadd [#allocation4], 4294964224 }
  0x24   :  { %1143 = dma.done.wait [#allocation7], 384  }
  0x25   :  { %1144 = vsyncadd [#allocation7], 4294966912  ;;  %v72_v0 = vlaneseq  ;;  %v41_v8 = vld [vmem:[#allocation3 + $0x8] sm:$0xff]  ;;  %v40_v10 = vld [vmem:[#allocation3] sm:$0xff]  ;;  %v68_v61 = vstv %s1281_s2  ;;  %s1149_s9 = smov [#allocation8]   ;;  %vm1032_vm0 = vcmask 57344  }
  0x26   :  { %v53_v9 = vld [vmem:[#allocation3 + $0x68] sm:$0xff]  ;;  %192 = vmatprep.subr.mxu1 %v41_v8  ;;  %v52_v11 = vld [vmem:[#allocation3 + $0x60] sm:$0xff]  ;;  %v43_v17 = vld [vmem:[#allocation3 + $0x18] sm:$0xff]  ;;  %s1040_s10 = sshll.u32 %s1149_s9, 4  ;;  %s1041_s10 = int_to_ptr.vmem [resolvable:$true] %s1040_s10 }
  0x27   :  { %v73_v1 = vshrl.u32 %v72_v0, 7  ;;  %612 = vmatprep.subr.mxu0 %v53_v9  ;;  %v1206_v12 = vld [vmem:[#allocation6] sm:$0xff]  ;;  %v1208_v13 = vld [vmem:[#allocation6 + $0x8] sm:$0xff]  ;;  %193 = vmatpush1.xpose.msra.mxu1 %v40_v10  ;;  %v55_v18 = vld [vmem:[#allocation3 + $0x78] sm:$0xff]  ;;  %s1119_s11 = scalar_lea.vmem %s1041_s10, 16  ;;  %s1123_s12 = scalar_lea.vmem %s1041_s10, 32 }
  0x28   :  { %613 = vmatpush1.xpose.msra.mxu0 %v52_v11  ;;  %262 = vmatprep.subr.mxu1 %v43_v17  ;;  %v42_v20 = vld [vmem:[#allocation3 + $0x10] sm:$0xff]  ;;  %v45_v25 = vld [vmem:[#allocation3 + $0x28] sm:$0xff]  ;;  %v44_v31 = vld [vmem:[#allocation3 + $0x20] sm:$0xff]  ;;  %p1120_p2 = scmp.ne.s32.totalorder %s1041_s10, %s1119_s11  ;;  %p1124_p3 = scmp.lt.s32.totalorder %s1041_s10, %s1041_s10 }
  0x29   :  { %v1194_v2 = vsub.s32 1, %v73_v1  ;;  %v1196_v3 = vsub.s32 5, %v73_v1  ;;  %v1198_v4 = vsub.s32 0, %v73_v1  ;;  %v1200_v5 = vsub.s32 4, %v73_v1  ;;  %682 = vmatprep.subr.mxu0 %v55_v18  ;;  %v54_v21 = vld [vmem:[#allocation3 + $0x70] sm:$0xff]  ;;  %v57_v27 = vld [vmem:[#allocation3 + $0x88] sm:$0xff]  ;;  %p1125_p4 = scmp.lt.s32.totalorder %s1123_s12, %s1119_s11 }
  0x2a   :  { %v1202_v6 = vsub.s32 3, %v73_v1  ;;  %v1204_v7 = vsub.s32 7, %v73_v1  ;;  %v1222_v24 = vsub.s32 2, %v73_v1  ;;  %v1224_v26 = vsub.s32 6, %v73_v1  ;;  %v1226_v28 = vld [vmem:[#allocation6 + $0x10] sm:$0xff]  ;;  %v56_v32 = vld [vmem:[#allocation3 + $0x80] sm:$0xff] }
  0x2b   :  { %v79_v14 = vrot.slane %v1206_v12, %v1194_v2  ;;  %v127_v15 = vrot.slane %v1208_v13, %v1196_v3  ;;  %v75_v16 = vrot.slane %v1206_v12, %v1198_v4  ;;  %v123_v19 = vrot.slane %v1208_v13, %v1200_v5  ;;  %v47_v35 = vld [vmem:[#allocation3 + $0x38] sm:$0xff]  ;;  %v46_v39 = vld [vmem:[#allocation3 + $0x30] sm:$0xff]  ;;  %v49_v43 = vld [vmem:[#allocation3 + $0x48] sm:$0xff]  ;;  %p1126_p5 = por %p1125_p4, %p1124_p3 }
  0x2c   :  { %v87_v22 = vrot.slane %v1206_v12, %v1202_v6  ;;  %v135_v23 = vrot.slane %v1208_v13, %v1204_v7  ;;  %v83_v29 = vrot.slane %v1206_v12, %v1222_v24  ;;  %v131_v30 = vrot.slane %v1208_v13, %v1224_v26  ;;  %v59_v36 = vld [vmem:[#allocation3 + $0x98] sm:$0xff]  ;;  %v58_v40 = vld [vmem:[#allocation3 + $0x90] sm:$0xff]  ;;  %v61_v44 = vld [vmem:[#allocation3 + $0xa8] sm:$0xff] }
  0x2d   :  { %256 = vmatprep.mubr.f32.mxu1 %v79_v14  ;;  %676 = vmatprep.mubr.f32.mxu0 %v127_v15  ;;  %v95_v33 = vrot.slane %v1206_v12, %v1196_v3  ;;  %v143_v34 = vrot.slane %v1226_v28, %v1194_v2  ;;  %v91_v37 = vrot.slane %v1206_v12, %v1200_v5  ;;  %v48_v47 = vld [vmem:[#allocation3 + $0x40] sm:$0xff]  ;;  %v51_v51 = vld [vmem:[#allocation3 + $0x58] sm:$0xff]  ;;  %v50_v55 = vld [vmem:[#allocation3 + $0x50] sm:$0xff]  ;;  %p1127_p6 = pnand %p1126_p5, %p1120_p2 }
  0x2e   :  { %257 = vmatmul.mubr.f32.vlgmr.msra.gmra.mrb[0].mxu1 %v75_v16  ;;  %677 = vmatmul.mubr.f32.vlgmr.msra.gmra.mrb[0].mxu0 %v123_v19  ;;  %v139_v38 = vrot.slane %v1226_v28, %v1198_v4  ;;  %v103_v41 = vrot.slane %v1206_v12, %v1204_v7  ;;  %v151_v42 = vrot.slane %v1226_v28, %v1202_v6  ;;  %v60_v48 = vld [vmem:[#allocation3 + $0xa0] sm:$0xff]  ;;  %v63_v52 = vld [vmem:[#allocation3 + $0xb8] sm:$0xff]  ;;  %v62_v56 = vld [vmem:[#allocation3 + $0xb0] sm:$0xff] }
  0x2f   :  { %263 = vmatpush1.xpose.msra.mxu1 %v42_v20  ;;  %683 = vmatpush1.xpose.msra.mxu0 %v54_v21  ;;  %v99_v45 = vrot.slane %v1206_v12, %v1224_v26  ;;  %v147_v46 = vrot.slane %v1226_v28, %v1222_v24  ;;  %v111_v49 = vrot.slane %v1208_v13, %v1194_v2 }
  0x30   :  { %326 = vmatprep.mubr.f32.mxu1 %v87_v22  ;;  %746 = vmatprep.mubr.f32.mxu0 %v135_v23  ;;  %v159_v50 = vrot.slane %v1226_v28, %v1196_v3  ;;  %v107_v53 = vrot.slane %v1208_v13, %v1198_v4  ;;  %v155_v54 = vrot.slane %v1226_v28, %v1200_v5 }
  0x31   :  { %332 = vmatprep.subr.mxu1 %v45_v25  ;;  %752 = vmatprep.subr.mxu0 %v57_v27  ;;  %v119_v57 = vrot.slane %v1208_v13, %v1202_v6  ;;  %v167_v58 = vrot.slane %v1226_v28, %v1204_v7  ;;  %v115_v59 = vrot.slane %v1208_v13, %v1222_v24 }
  0x32   :  { %v163_v60 = vrot.slane %v1226_v28, %v1224_v26 }
  0x36   :  { %327 = vmatmul.mubr.f32.vlgmr.msra.gmra.mrb[0].mxu1 %v83_v29  ;;  %747 = vmatmul.mubr.f32.vlgmr.msra.gmra.mrb[0].mxu0 %v131_v30 }
  0x37   :  { %333 = vmatpush1.xpose.msra.mxu1 %v44_v31  ;;  %753 = vmatpush1.xpose.msra.mxu0 %v56_v32 }
  0x38   :  { %396 = vmatprep.mubr.f32.mxu1 %v95_v33  ;;  %816 = vmatprep.mubr.f32.mxu0 %v143_v34 }
  0x39   :  { %402 = vmatprep.subr.mxu1 %v47_v35  ;;  %822 = vmatprep.subr.mxu0 %v59_v36 }
  0x3e   :  { %397 = vmatmul.mubr.f32.vlgmr.msra.gmra.mrb[0].mxu1 %v91_v37  ;;  %817 = vmatmul.mubr.f32.vlgmr.msra.gmra.mrb[0].mxu0 %v139_v38 }
  0x3f   :  { %403 = vmatpush1.xpose.msra.mxu1 %v46_v39  ;;  %823 = vmatpush1.xpose.msra.mxu0 %v58_v40 }
  0x40   :  { %466 = vmatprep.mubr.f32.mxu1 %v103_v41  ;;  %886 = vmatprep.mubr.f32.mxu0 %v151_v42 }
  0x41   :  { %472 = vmatprep.subr.mxu1 %v49_v43  ;;  %892 = vmatprep.subr.mxu0 %v61_v44 }
  0x46   :  { %467 = vmatmul.mubr.f32.vlgmr.msra.gmra.mrb[0].mxu1 %v99_v45  ;;  %887 = vmatmul.mubr.f32.vlgmr.msra.gmra.mrb[0].mxu0 %v147_v46 }
  0x47   :  { %473 = vmatpush1.xpose.msra.mxu1 %v48_v47  ;;  %893 = vmatpush1.xpose.msra.mxu0 %v60_v48 }
  0x48   :  { %536 = vmatprep.mubr.f32.mxu1 %v111_v49  ;;  %956 = vmatprep.mubr.f32.mxu0 %v159_v50 }
  0x49   :  { %542 = vmatprep.subr.mxu1 %v51_v51  ;;  %962 = vmatprep.subr.mxu0 %v63_v52 }
  0x4e   :  { %537 = vmatmul.mubr.f32.vlgmr.msra.gmra.mrb[0].mxu1 %v107_v53  ;;  %957 = vmatmul.mubr.f32.vlgmr.msra.gmra.mrb[0].mxu0 %v155_v54 }
  0x4f   :  { %543 = vmatpush1.xpose.msra.mxu1 %v50_v55  ;;  %963 = vmatpush1.xpose.msra.mxu0 %v62_v56 }
  0x50   :  { %606 = vmatprep.mubr.f32.mxu1 %v119_v57  ;;  %1026 = vmatprep.mubr.f32.mxu0 %v167_v58 }
  0x56   :  { %607 = vmatmul.mubr.f32.vlgmr.msra.gmra.mrb[0].mxu1 %v115_v59  ;;  %1027 = vmatmul.mubr.f32.vlgmr.msra.gmra.mrb[0].mxu0 %v163_v60 }
 0x129   :  { %v608_v62 = vpop.f32.mrb[0].mxu1  ;;  %v1028_v63 = vpop.f32.mrb[0].mxu0 }
 0x12a   :  { %v1050_v0 = vadd.f32 %v608_v62, %v68_v61  ;;  %v610_v1 = vpop.f32.mrb[1].mxu1  ;;  %v1030_v2 = vpop.f32.mrb[1].mxu0 }
 0x12c   :  { %v1051_v3 = vadd.f32 %v1050_v0, %v1028_v63 }
 0x12e   :  { %1033 = vst.msk [vmem:[#allocation8] sm:$0x1] %vm1032_vm0, %v1051_v3 }
 0x12f   :  { %1130 = shalt.err (!%p1127_p6)
}
 0x130   :  { %s1131_s14 = scalar_lea.hbm %s1282_s3, 16 }
 0x131   :  { %p1132_p7 = scmp.ne.s32.totalorder %s1282_s3, %s1131_s14  ;;  %p1135_p8 = scmp.lt.u32.totalorder %s1131_s14, %s1282_s3 }
 0x133   :  { %p1137_p9 = pnand %p1135_p8, %p1132_p7 }
 0x135   :  { %1140 = shalt.err (!%p1137_p9)
}
 0x136   :  { %1043 = dma.vmem_to_hbm [thread:$0]  %s1041_s10, 16, %s1282_s3, [#allocation5]  }
 0x137   :  { %1145 = dma.done.wait [#allocation5], 16  }
 0x138   :  { %1146 = vsyncadd [#allocation5], 4294967280 }
 0x139   :  { %1047 = vsyncpa [#allocation4], 1 }
 0x13a   :  { %1048 = vsyncpa [#allocation7], 1 }
 0x13b   :  { %1049 = vsyncpa [#allocation5], 1 }

</bundles_post_ra>
